<compile_context>
chip_gen: v7x
topology: tpu7x:2x2x1
jax: 0.10.0
libtpu: 0.0.40
codegen_flags: <defaults>
</compile_context>

<pallas_src>
import jax
import jax.numpy as jnp
from jax.experimental import pallas as pl
from jax.experimental.pallas import tpu as pltpu

_LANES = 128                      # vreg lane width: last dim of the slab is lane-dense
_TILE_TARGET_BYTES = 4 * 1024 * 1024   # ~4 MiB per tile; x4 (in+out, dbl-buffered) = 16 MiB
_VMEM_LIMIT_BYTES = 32 * 1024 * 1024   # explicit: v5e default scoped is 16 MiB, v7x phys is 64 MiB


def _copy_kernel(x_ref, o_ref):
    # Whole-tile VMEM load + full-width (unmasked) lane-dense store.
    o_ref[...] = x_ref[...]


def _block_rows_for(dtype, rows):
    """Pick the largest sublane-aligned block_rows with tile <= ~4 MiB."""
    itemsize = jnp.dtype(dtype).itemsize
    br = max(_TILE_TARGET_BYTES // (_LANES * itemsize), 32)
    br -= br % 32          # multiple of 32 covers f32(8)/bf16(16)/int8(32) sublane packing
    br = max(br, 32)
    # Full-extent block is always legal when the array is smaller than one tile.
    return rows if rows <= br else br


def _tiled_identity(flat):
    """Streaming identity copy of a lane-dense (rows, 128) slab."""
    rows = flat.shape[0]
    block_rows = _block_rows_for(flat.dtype, rows)
    grid = (pl.cdiv(rows, block_rows),)
    return pl.pallas_call(
        _copy_kernel,
        out_shape=jax.ShapeDtypeStruct((rows, _LANES), flat.dtype),
        grid=grid,
        in_specs=[pl.BlockSpec((block_rows, _LANES), lambda i: (i, 0))],
        out_specs=pl.BlockSpec((block_rows, _LANES), lambda i: (i, 0)),
        compiler_params=pltpu.CompilerParams(
            dimension_semantics=("parallel",),
            vmem_limit_bytes=_VMEM_LIMIT_BYTES,
        ),
    )(flat)


@jax.jit
def _identity_copy(x: jax.Array) -> jax.Array:
    n = x.size
    if n == 0:
        return x
    orig_shape = x.shape

    if n % _LANES == 0:
        # Lane-dense path: (rows, 128) slab, tiled over rows.
        flat = x.reshape(n // _LANES, _LANES)
        return _tiled_identity(flat).reshape(orig_shape)

    # Rare path (element count not a multiple of 128): pad up to a multiple of
    # 128, reuse the tiled lane-dense path, then slice back.  Keeps unmasked
    # vst and pipelined DMA, and never builds an untileable (1, n) block.
    padded_n = pl.cdiv(n, _LANES) * _LANES
    flat = jnp.pad(x.reshape(-1), (0, padded_n - n)).reshape(padded_n // _LANES, _LANES)
    out = _tiled_identity(flat)
    return out.reshape(-1)[:n].reshape(orig_shape)


def print_layer(x: jax.Array) -> jax.Array:
    # PyTorch PrintLayer prints x.shape (static metadata) then returns x.
    # Shapes are static in JAX, so the print happens here in the (non-jitted)
    # wrapper — once per eager call, matching PyTorch.  Inside a jitted caller
    # this prints once at trace time; swap to jax.debug.print if a per-call
    # device-side print is required (accepting its host-callback cost).
    print(tuple(x.shape))
    return _identity_copy(x)


if __name__ == "__main__":
    key = jax.random.PRNGKey(0)

    # Small NCHW input consistent with a CNN feature map (lane-dense path).
    x = jax.random.normal(key, (2, 4, 16, 16), dtype=jnp.float32)
    y = print_layer(x)
    jax.block_until_ready(y)
    assert y.shape == x.shape and y.dtype == x.dtype
    assert bool(jnp.all(y == x))

    # Also exercise the padded path (element count not a multiple of 128).
    x2 = jax.random.normal(jax.random.PRNGKey(1), (3, 5, 7), dtype=jnp.float32)
    y2 = print_layer(x2)
    jax.block_until_ready(y2)
    assert y2.shape == x2.shape and y2.dtype == x2.dtype
    assert bool(jnp.all(y2 == x2))

    print("KERNEL_OK")
</pallas_src>

<mosaic_0001>
module attributes {stable_mosaic.version = 11 : i64} {
  func.func @_copy_kernel(%arg0: i32, %arg1: memref<16x128xf32, #tpu.memory_space<vmem>>, %arg2: memref<16x128xf32, #tpu.memory_space<vmem>>) attributes {dimension_semantics = [#tpu.dimension_semantics<parallel>], iteration_bounds = array<i64: 1>, scalar_prefetch = 0 : i64, scratch_operands = 0 : i64, tpu.core_type = #tpu.core_type<tc>, window_params = [{transform_indices = @transform_0, window_bounds = array<i64: 16, 128>}, {transform_indices = @transform_1, window_bounds = array<i64: 16, 128>}]} {
    %c0 = arith.constant 0 : index
    %c0_0 = arith.constant 0 : index
    %0 = vector.load %arg1[%c0, %c0_0] : memref<16x128xf32, #tpu.memory_space<vmem>>, vector<16x128xf32>
    %c0_1 = arith.constant 0 : index
    %c0_2 = arith.constant 0 : index
    %1 = vector.load %arg2[%c0_1, %c0_2] : memref<16x128xf32, #tpu.memory_space<vmem>>, vector<16x128xf32>
    tpu.vector_store %arg2[%c0_1, %c0_2], %0 {strides = array<i32>} : memref<16x128xf32, #tpu.memory_space<vmem>>, vector<16x128xf32>,
    return
  }
  func.func @transform_0(%arg0: i32) -> (i32, i32) {
    %c0_i32 = arith.constant 0 : i32
    %c0_i32_0 = arith.constant 0 : i32
    return %arg0, %c0_i32 : i32, i32
  }
  func.func @transform_1(%arg0: i32) -> (i32, i32) {
    %c0_i32 = arith.constant 0 : i32
    %c0_i32_0 = arith.constant 0 : i32
    return %arg0, %c0_i32 : i32, i32
  }
}

</mosaic_0001>

<bundles_post_ra>
// kernel: _identity_copy.1
= control target key start
LH: loop header
LB: loop body
LE: loop exit
PB: predicated region body
PF: predicated region fallthrough
CT: control target
= control target key end

     0   :  { %s38_s0 = inlined_call_operand.vmem [shape: f32[16,128], index: 0, kind: input, shape index: {}]   ;;  %s39_s1 = inlined_call_operand.vmem [shape: f32[16,128], index: 1, kind: output, shape index: {}]  }
   0x1   :  { %v8_v0 = vld [vmem:[%s38_s0] sm:$0xff]  ;;  %v9_v1 = vld [vmem:[%s38_s0 + $0x8] sm:$0xff] }
   0x2   :  { %10 = vst [vmem:[%s39_s1] sm:$0xff] %v8_v0  ;;  %11 = vst [vmem:[%s39_s1 + $0x8] sm:$0xff] %v9_v1 }

</bundles_post_ra>
